<compile_context>
chip_gen: v7x
topology: tpu7x:2x2x1
jax: 0.10.0
libtpu: 0.0.40
codegen_flags: <defaults>
</compile_context>

<pallas_src>
import math

import jax
import jax.numpy as jnp
from jax.experimental import pallas as pl
from jax.experimental.pallas import tpu as pltpu

_MIB = 1024 * 1024


def _round_up(a, b):
    return -(-a // b) * b


def _vmem_plan():
    """Return (tile VMEM budget, scoped vmem_limit_bytes), generation-aware."""
    try:
        cap = pltpu.get_tpu_info().vmem_capacity_bytes
    except Exception:
        cap = 64 * _MIB                     # conservative: assume small-VMEM part
    if cap >= 100 * _MIB:                   # v5e / v6e: 128 MiB physical VMEM
        return 48 * _MIB, 64 * _MIB
    return 24 * _MIB, 32 * _MIB             # v7x: 64 MiB physical VMEM


def _value_kernel_resident(x_ref, w_ref, o_ref):
    # x_ref: (tm, K) tile; w_ref: (K, N) VMEM-resident weight; o_ref: (tm, N)
    o_ref[...] = jnp.dot(
        x_ref[...], w_ref[...], preferred_element_type=jnp.float32
    ).astype(o_ref.dtype)


def _value_kernel_ktiled(x_ref, w_ref, o_ref, acc_ref):
    # Grid = (M, N, K); K is the (last, "arbitrary") reduction axis.
    @pl.when(pl.program_id(2) == 0)
    def _init():
        acc_ref[...] = jnp.zeros_like(acc_ref)

    acc_ref[...] += jnp.dot(
        x_ref[...], w_ref[...], preferred_element_type=jnp.float32
    )

    @pl.when(pl.program_id(2) == pl.num_programs(2) - 1)
    def _finalize():
        o_ref[...] = acc_ref[...].astype(o_ref.dtype)


def value_forward(x, weight, *, force_pallas=False):
    """Pallas equivalent of Value.forward.

    x:      (..., dim_input)
    weight: (dim_val, dim_input)   (native nn.Linear layout)
    returns (..., dim_val) with out = x @ weight.T
    """
    dim_val, dim_input = weight.shape
    lead_shape = x.shape[:-1]
    m = int(math.prod(lead_shape)) if lead_shape else 1
    K, N = dim_input, dim_val

    # Small-problem dispatch: pallas_call fixed overhead (~0.35 us/step plus
    # custom-call dispatch) dominates KFLOP-scale problems on every generation.
    if not force_pallas and 2 * m * K * N < (4 << 20):
        return jnp.einsum("...k,nk->...n", x, weight)

    x_itemsize = jnp.dtype(x.dtype).itemsize
    w_itemsize = jnp.dtype(weight.dtype).itemsize
    out_dtype = x.dtype
    o_itemsize = jnp.dtype(out_dtype).itemsize
    sub = max(8, 32 // x_itemsize)          # sublane quantum: 8 (f32) / 16 (bf16)

    x2d = x.reshape(m, K)
    # One-time transpose to (K, N): MXU wants the RHS contraction on the
    # sublane axis; contracting the native (N, K) weight on its lane axis
    # would force a per-grid-step XLU transpose inside the kernel.
    w_kn = weight.T

    vmem_budget, vmem_limit = _vmem_plan()
    w_res_bytes = K * N * w_itemsize        # single-buffered resident weight

    if w_res_bytes <= vmem_budget // 2:
        # --------- M-only grid, VMEM-resident (K, N) weight ----------------
        row_bytes = 2 * (K * x_itemsize + N * o_itemsize)   # 2x-buffered x/out
        tm_cap = max(sub, (vmem_budget - w_res_bytes) // max(row_bytes, 1))
        tm = min(512, int(tm_cap))
        tm = max(sub, (tm // sub) * sub)
        m_sub = _round_up(m, sub)
        if m_sub >= 2 * sub:
            # Give the v7x megacore at least 2 grid steps when M allows.
            tm = min(tm, max(sub, ((m_sub // 2) // sub) * sub))
        tm = min(tm, m_sub)
        grid = (pl.cdiv(m, tm),)            # no pad: Pallas masks the OOB rows
                                            # of the last partial block.

        cost = pl.CostEstimate(
            flops=2 * m * K * N,
            bytes_accessed=(m * K * x_itemsize
                            + K * N * w_itemsize
                            + m * N * o_itemsize),
            transcendentals=0,
        )

        def _call(weight_spec):
            return pl.pallas_call(
                _value_kernel_resident,
                out_shape=jax.ShapeDtypeStruct((m, N), out_dtype),
                grid_spec=pltpu.PrefetchScalarGridSpec(
                    num_scalar_prefetch=0,
                    grid=grid,
                    in_specs=[
                        pl.BlockSpec((tm, K), lambda i: (i, 0)),
                        weight_spec,
                    ],
                    out_specs=pl.BlockSpec((tm, N), lambda i: (i, 0)),
                ),
                compiler_params=pltpu.CompilerParams(
                    dimension_semantics=("parallel",),
                    vmem_limit_bytes=vmem_limit,
                ),
                cost_estimate=cost,
            )(x2d, w_kn)

        try:
            # Weight block index never changes -> single-buffer it.
            out2d = _call(
                pl.BlockSpec((K, N), lambda i: (0, 0),
                             pipeline_mode=pl.Buffered(1)))
        except Exception:
            out2d = _call(pl.BlockSpec((K, N), lambda i: (0, 0)))

    else:
        # --------- (M, N, K)-tiled fallback: weight too large for VMEM -----
        tm = min(512, _round_up(m, sub))
        tm = max(sub, (tm // sub) * sub)
        tn = 256 if N >= 256 else N
        tk = 512 if K >= 512 else K

        # Zero-pad K so every K tile is fully in-bounds (zeros contribute
        # nothing to the reduction); M/N partial blocks rely on masked writes.
        k_pad = _round_up(K, tk)
        if k_pad != K:
            x2d = jnp.pad(x2d, ((0, 0), (0, k_pad - K)))
            w_kn = jnp.pad(w_kn, ((0, k_pad - K), (0, 0)))

        grid = (pl.cdiv(m, tm), pl.cdiv(N, tn), k_pad // tk)
        cost = pl.CostEstimate(
            flops=2 * m * k_pad * N,
            bytes_accessed=(pl.cdiv(N, tn) * m * k_pad * x_itemsize
                            + k_pad * N * w_itemsize
                            + m * N * o_itemsize),
            transcendentals=0,
        )
        out2d = pl.pallas_call(
            _value_kernel_ktiled,
            out_shape=jax.ShapeDtypeStruct((m, N), out_dtype),
            grid_spec=pltpu.PrefetchScalarGridSpec(
                num_scalar_prefetch=0,
                grid=grid,
                in_specs=[
                    pl.BlockSpec((tm, tk), lambda i, j, k: (i, k)),
                    pl.BlockSpec((tk, tn), lambda i, j, k: (k, j)),
                ],
                out_specs=pl.BlockSpec((tm, tn), lambda i, j, k: (i, j)),
                scratch_shapes=[pltpu.VMEM((tm, tn), jnp.float32)],
            ),
            compiler_params=pltpu.CompilerParams(
                dimension_semantics=("parallel", "parallel", "arbitrary"),
                vmem_limit_bytes=vmem_limit,
            ),
            cost_estimate=cost,
        )(x2d, w_kn)

    return out2d.reshape(*lead_shape, N)


if __name__ == "__main__":
    # Small shapes consistent with the module: x = [batch, seq, dim_input]
    batch, seq, dim_input, dim_val = 2, 8, 32, 32

    key = jax.random.PRNGKey(0)
    kx, kw = jax.random.split(key)

    x = jax.random.normal(kx, (batch, seq, dim_input), dtype=jnp.float32)
    # Deterministic init matching nn.Linear's kaiming-uniform-ish scale.
    bound = 1.0 / math.sqrt(dim_input)
    weight = jax.random.uniform(
        kw, (dim_val, dim_input), dtype=jnp.float32, minval=-bound, maxval=bound
    )

    ref = jnp.einsum("bsk,nk->bsn", x, weight)

    # Force the Pallas path (the demo is small enough that the auto-dispatcher
    # would otherwise route to plain XLA).
    out_pallas = jax.block_until_ready(value_forward(x, weight, force_pallas=True))
    assert out_pallas.shape == (batch, seq, dim_val)
    assert jnp.allclose(out_pallas, ref, atol=1e-5, rtol=1e-5)

    # The default auto-dispatch path must match as well.
    out_auto = jax.block_until_ready(value_forward(x, weight))
    assert jnp.allclose(out_auto, ref, atol=1e-5, rtol=1e-5)

    print("KERNEL_OK")
</pallas_src>

<mosaic_0001>
module attributes {stable_mosaic.version = 11 : i64} {
  func.func @_value_kernel_resident(%arg0: i32, %arg1: memref<8x32xf32, #tpu.memory_space<vmem>>, %arg2: memref<32x32xf32, #tpu.memory_space<vmem>>, %arg3: memref<8x32xf32, #tpu.memory_space<vmem>>) attributes {dimension_semantics = [#tpu.dimension_semantics<parallel>], iteration_bounds = array<i64: 2>, scalar_prefetch = 0 : i64, scratch_operands = 0 : i64, tpu.core_type = #tpu.core_type<tc>, window_params = [{transform_indices = @transform_0, window_bounds = array<i64: 8, 32>}, {pipeline_mode = #tpu.pipeline_mode<synchronous>, transform_indices = @transform_1, window_bounds = array<i64: 32, 32>}, {transform_indices = @transform_2, window_bounds = array<i64: 8, 32>}]} {
    %c0 = arith.constant 0 : index
    %c0_0 = arith.constant 0 : index
    %0 = vector.load %arg1[%c0, %c0_0] : memref<8x32xf32, #tpu.memory_space<vmem>>, vector<8x32xf32>
    %c0_1 = arith.constant 0 : index
    %c0_2 = arith.constant 0 : index
    %1 = vector.load %arg2[%c0_1, %c0_2] : memref<32x32xf32, #tpu.memory_space<vmem>>, vector<32x32xf32>
    %cst = arith.constant dense<0.000000e+00> : vector<8x32xf32>
    %2 = tpu.matmul %0, %1, %cst {dimension_numbers = #tpu.dot_dimension_numbers<[1], [0], [0], [1], [0, 0, 1, 1], [], []>} : vector<8x32xf32>, vector<32x32xf32>, vector<8x32xf32> -> vector<8x32xf32>
    %c0_3 = arith.constant 0 : index
    %c0_4 = arith.constant 0 : index
    %3 = vector.load %arg3[%c0_3, %c0_4] : memref<8x32xf32, #tpu.memory_space<vmem>>, vector<8x32xf32>
    tpu.vector_store %arg3[%c0_3, %c0_4], %2 {strides = array<i32>} : memref<8x32xf32, #tpu.memory_space<vmem>>, vector<8x32xf32>,
    return
  }
  func.func @transform_0(%arg0: i32) -> (i32, i32) {
    %c0_i32 = arith.constant 0 : i32
    %c0_i32_0 = arith.constant 0 : i32
    return %arg0, %c0_i32 : i32, i32
  }
  func.func @transform_1(%arg0: i32) -> (i32, i32) {
    %c0_i32 = arith.constant 0 : i32
    %c0_i32_0 = arith.constant 0 : i32
    %c0_i32_1 = arith.constant 0 : i32
    return %c0_i32, %c0_i32_0 : i32, i32
  }
  func.func @transform_2(%arg0: i32) -> (i32, i32) {
    %c0_i32 = arith.constant 0 : i32
    %c0_i32_0 = arith.constant 0 : i32
    return %arg0, %c0_i32 : i32, i32
  }
}

module attributes {stable_mosaic.version = 11 : i64} {
  func.func @_value_kernel_resident(%arg0: i32, %arg1: memref<8x32xf32, #tpu.memory_space<vmem>>, %arg2: memref<32x32xf32, #tpu.memory_space<vmem>>, %arg3: memref<8x32xf32, #tpu.memory_space<vmem>>) attributes {dimension_semantics = [#tpu.dimension_semantics<parallel>], iteration_bounds = array<i64: 2>, scalar_prefetch = 0 : i64, scratch_operands = 0 : i64, tpu.core_type = #tpu.core_type<tc>, window_params = [{transform_indices = @transform_0, window_bounds = array<i64: 8, 32>}, {pipeline_mode = #tpu.pipeline_mode<synchronous>, transform_indices = @transform_1, window_bounds = array<i64: 32, 32>}, {transform_indices = @transform_2, window_bounds = array<i64: 8, 32>}]} {
    %c0 = arith.constant 0 : index
    %c0_0 = arith.constant 0 : index
    %0 = vector.load %arg1[%c0, %c0_0] : memref<8x32xf32, #tpu.memory_space<vmem>>, vector<8x32xf32>
    %c0_1 = arith.constant 0 : index
    %c0_2 = arith.constant 0 : index
    %1 = vector.load %arg2[%c0_1, %c0_2] : memref<32x32xf32, #tpu.memory_space<vmem>>, vector<32x32xf32>
    %cst = arith.constant dense<0.000000e+00> : vector<8x32xf32>
    %2 = tpu.matmul %0, %1, %cst {dimension_numbers = #tpu.dot_dimension_numbers<[1], [0], [0], [1], [0, 0, 1, 1], [], []>} : vector<8x32xf32>, vector<32x32xf32>, vector<8x32xf32> -> vector<8x32xf32>
    %c0_3 = arith.constant 0 : index
    %c0_4 = arith.constant 0 : index
    %3 = vector.load %arg3[%c0_3, %c0_4] : memref<8x32xf32, #tpu.memory_space<vmem>>, vector<8x32xf32>
    tpu.vector_store %arg3[%c0_3, %c0_4], %2 {strides = array<i32>} : memref<8x32xf32, #tpu.memory_space<vmem>>, vector<8x32xf32>,
    return
  }
  func.func @transform_0(%arg0: i32) -> (i32, i32) {
    %c0_i32 = arith.constant 0 : i32
    %c0_i32_0 = arith.constant 0 : i32
    return %arg0, %c0_i32 : i32, i32
  }
  func.func @transform_1(%arg0: i32) -> (i32, i32) {
    %c0_i32 = arith.constant 0 : i32
    %c0_i32_0 = arith.constant 0 : i32
    %c0_i32_1 = arith.constant 0 : i32
    return %c0_i32, %c0_i32_0 : i32, i32
  }
  func.func @transform_2(%arg0: i32) -> (i32, i32) {
    %c0_i32 = arith.constant 0 : i32
    %c0_i32_0 = arith.constant 0 : i32
    return %arg0, %c0_i32 : i32, i32
  }
}

</mosaic_0001>

<bundles_post_ra>
// kernel: tpu_custom_call.1
= control target key start
LH: loop header
LB: loop body
LE: loop exit
PB: predicated region body
PF: predicated region fallthrough
CT: control target
= control target key end

     0   :  { %7 = vsyncpa [#allocation3], 0  ;;  %s796_s0 = inlined_call_operand.hbm [shape: f32[16,32], index: 0, kind: input, shape index: {}]   ;;  %s797_s1 = inlined_call_operand.hbm [shape: f32[32,32], index: 1, kind: input, shape index: {}]   ;;  %s798_s2 = inlined_call_operand.hbm [shape: f32[16,32], index: 2, kind: output, shape index: {}]  }
   0x1   :  { %9 = vsyncpa [#allocation3 + $0x1], 0 }
   0x2   :  { %10 = vsyncpa [#allocation6], 0 }
   0x3   :  { %11 = vsyncpa [#allocation4], 0 }
   0x4   :  { %13 = vsyncpa [#allocation4 + $0x1], 0  ;;  %s600_s9 = smov 0   ;;  %s602_s10 = smov 0  }
   0x5   :  { %s604_s11 = smov 0   ;;  %s606_s12 = smov 0  }
   0x6 LB: > { %s621_s13 = sadd.s32 4294967295, %s575_s12   ;;  %s348_s14 = sadd.s32 4294967294, %s575_s12   ;;  %s575_s12 = sphi %s606_s12, %s818_s12   ;;  %s571_s11 = sphi %s604_s11, %s817_s11   ;;  %s567_s10 = sphi %s602_s10, %s816_s10   ;;  %s563_s9 = sphi %s600_s9, %s815_s9  }
   0x7   : > { %p39_p0 = scmp.ne.s32.totalorder %s567_s10, %s563_s9  ;;  %p799_p1 = scmp.eq.s32.totalorder %s621_s13, 0 }
   0x8   : > { %p90_p3 = scmp.eq.s32.totalorder %s348_s14, 1  ;;  %p349_p5 = scmp.ge.s32.totalorder %s575_s12, 1 }
   0x9   : > { %p630_p4 = por %p799_p1, %p39_p0  ;;  %p97_p7 = scmp.lt.s32.totalorder %s575_s12, 3 }
   0xa   : > { %p635_p6 = por %p90_p3, %p39_p0  ;;  %s577_s18 = smov [#allocation5]  }
   0xb   : > { %s802_s15 = scalar_select %p630_p4, 1, 0 }
   0xc   : > { %s803_s16 = scalar_select %p635_p6, 1, 0 }
   0xd   : > { %p640_p8 = pnand %p349_p5, %p97_p7  ;;  %s109_s19 = sshll.u32 %s577_s18, 4  ;;  %s644_s19 = int_to_ptr.vmem [resolvable:$true] %s109_s19 }
   0xe   : > { %s656_s21 = sadd.s32 1, %s575_s12   ;;  %s26_s22 = sadd.s32 1, %s571_s11 }
   0xf   : > { %s804_s17 = scalar_select %p640_p8, 1, 0 }
  0x10   : > { %p393_p9 = pneg %p640_p8  ;;  %s23_s23 = ssub.s32 %s575_s12, %s656_s21 }
  0x11   : > { %s447_s26 = scalar_lea.hbm %s797_s1, 512 }
  0x12   : > { %p651_p11 = pnand %p393_p9, %p799_p1  ;;  %p448_p12 = scmp.ne.s32.totalorder %s797_s1, %s447_s26 }
  0x13   : > { %p454_p5 = scmp.lt.u32.totalorder %s447_s26, %s797_s1 }
  0x14   : > { %p449_p13 = pneg %p651_p11 }
  0x16   : > { %p450_p0 = pnand %p449_p13, %p448_p12 }
  0x18   : > { %p451_p3 = pneg %p450_p0 }
  0x1a   : > { %p456_p7 = pnand %p454_p5, %p451_p3 }
  0x1c   : > { %459 = shalt.err (!%p456_p7)
}
  0x1d   : > { %s460_s3 = scalar_lea.vmem %s644_s19, 512  ;;  %p468_p2 = scmp.lt.s32.totalorder %s644_s19, %s644_s19 }
  0x1e   : > { %p461_p9 = scmp.ne.s32.totalorder %s644_s19, %s460_s3  ;;  %p469_p6 = scmp.lt.s32.totalorder %s460_s3, %s460_s3 }
  0x20   : > { %p463_p10 = pnand %p461_p9, %p449_p13  ;;  %p470_p4 = por %p469_p6, %p468_p2 }
  0x22   : > { %p464_p1 = pneg %p463_p10 }
  0x24   : > { %p471_p8 = pnand %p470_p4, %p464_p1 }
  0x26   : > { %474 = shalt.err (!%p471_p8)
}
  0x27   : > { %s578_s4 = smov 128   ;;  %s579_s5 = smov 8  }
  0x28   : > { %396 = dma.hbm_to_vmem [thread:$0]  (!%p651_p11), %s797_s1, 512, %s644_s19, [#allocation6], %s578_s4, %s578_s4, %s579_s5  }
  0x29   : > { %p24_p2 = scmp.eq.s32.totalorder %s23_s23, 0  ;;  %p33_p1 = scmp.ne.s32.totalorder %s571_s11, %s567_s10 }
  0x2a   : > { %p34_p4 = scmp.eq.s32.totalorder %s575_s12, 0  ;;  %p406_p6 = scmp.lt.s32.totalorder %s575_s12, 2 }
  0x2b   : > { %s687_s8 = scalar_select %p24_p2, %s571_s11, %s26_s22  }
  0x2c   : > { %p35_p8 = por %p34_p4, %p33_p1  ;;  %p806_p10 = scmp.eq.s32.totalorder %s621_s13, 1 }
  0x2d   : > { %s123_s18 = sand.u32 1, %s571_s11   ;;  %s353_s24 = sshll.u32 %s575_s12, 7 }
  0x2e   : > { %p691_p12 = por %p806_p10, %p33_p1  ;;  %s352_s25 = sshll.u32 %s123_s18, 3 }
  0x2f   : > { %s700_s27 = scalar_lea.hbm %s796_s0, %s353_s24  ;;  %s127_s19 = scalar_lea.vmem [#allocation2], %s352_s25 }
  0x30   : > { %s134_s22 = sshll.u32 %s127_s19, 4  ;;  %p702_p11 = pnand %p406_p6, %p35_p8  ;;  %s706_s22 = int_to_ptr.vmem [resolvable:$true] %s134_s22 }
  0x31   : > { %s124_s28 = scalar_lea.sflag [#allocation3], %s123_s18  ;;  %s475_s29 = scalar_lea.hbm %s700_s27, 128 }
  0x32   : > { %p476_p13 = scmp.ne.s32.totalorder %s700_s27, %s475_s29  ;;  %p477_p0 = pneg %p702_p11 }
  0x33   : > { %s480_s4 = scalar_lea.hbm %s796_s0, 256  ;;  %p481_p7 = scmp.lt.u32.totalorder %s700_s27, %s796_s0 }
  0x34   : > { %p478_p3 = pnand %p477_p0, %p476_p13  ;;  %p482_p9 = scmp.lt.u32.totalorder %s480_s4, %s475_s29 }
  0x35   : > { %p484_p1 = scmp.lt.u32.totalorder %s475_s29, %s700_s27 }
  0x36   : > { %p479_p5 = pneg %p478_p3  ;;  %p483_p2 = por %p482_p9, %p481_p7 }
  0x38   : > { %p485_p4 = por %p484_p1, %p483_p2 }
  0x3a   : > { %p486_p6 = pnand %p485_p4, %p479_p5 }
  0x3c   : > { %489 = shalt.err (!%p486_p6)
}
  0x3d   : > { %s490_s7 = scalar_lea.vmem %s706_s22, 128  ;;  %s580_s18 = smov [#allocation2]  }
  0x3e   : > { %p491_p8 = scmp.ne.s32.totalorder %s706_s22, %s490_s7  ;;  %s495_s24 = sshll.u32 %s580_s18, 4  ;;  %s496_s24 = int_to_ptr.vmem [resolvable:$false] %s495_s24 }
  0x3f   : > { %s497_s25 = scalar_lea.vmem %s496_s24, 256  ;;  %p498_p3 = scmp.lt.s32.totalorder %s706_s22, %s496_s24 }
  0x40   : > { %p493_p10 = pnand %p491_p8, %p477_p0  ;;  %p499_p7 = scmp.lt.s32.totalorder %s497_s25, %s490_s7 }
  0x42   : > { %p494_p13 = pneg %p493_p10  ;;  %p500_p9 = por %p499_p7, %p498_p3 }
  0x44   : > { %p501_p2 = pnand %p500_p9, %p494_p13 }
  0x46   : > { %504 = shalt.err (!%p501_p2)
}
  0x47   : > { %400 = dma.hbm_to_vmem [thread:$0]  (!%p702_p11), %s700_s27, 128, %s706_s22, %s124_s28  }
  0x48   : > { %p809_p5 = scmp.ne.s32.totalorder %s804_s17, 0 }
  0x49   : > { %s736_s20 = sand.u32 (!%p809_p5), 1, %s567_s10   ;;  %p810_p0 = scmp.ne.s32.totalorder (!%p809_p5), %s802_s15, 0 }
  0x4a   : > { %143 = sbr.rel (%p809_p5) target bundleno = 321 (0x141), region = 28  ;;  %s355_s26 = sshll.u32 (!%p809_p5), %s736_s20, 3 }
  0x4b   : > { %s146_s19 = scalar_lea.sflag (!%p809_p5), [#allocation3], %s736_s20  ;;  %s149_s29 = scalar_lea.vmem (!%p809_p5), [#allocation2], %s355_s26 }
  0x51   : > { %550 = dma.done.wait (%p810_p0), %s146_s19, 128  }
  0x52   : > { %552 = vsyncadd (%p810_p0), %s146_s19, 4294967168  ;;  %p811_p1 = scmp.eq.s32.totalorder %s621_s13, 0 }
  0x54   : > { %554 = dma.done.wait (%p811_p1), [#allocation6], 512   ;;  %p812_p11 = pmov %p811_p1 }
  0x55   : > { %v581_v0 = vmov 0.0|0.0   ;;  %vm582_vm0 = vmmov 0   ;;  %v583_v1 = vmov 0.0   ;;  %v175_v2 = vld [vmem:[#allocation5] sm:$0xff]  ;;  %v176_v3 = vld [vmem:[#allocation5 + $0x8] sm:$0xff]  ;;  %v177_v4 = vld [vmem:[#allocation5 + $0x10] sm:$0xff] }
  0x56   : > { %556 = vsyncadd (%p812_p11), [#allocation6], 4294966784  ;;  %379 = vmatprep.subr.bf16.mxu0 %v581_v0  ;;  %376 = vmatprep.mubr.msk.f32.mxu0 %vm582_vm0, %v583_v1  ;;  %v380_v5 = vpack.c.bf16 %v176_v3, %v175_v2  ;;  %v178_v6 = vld [vmem:[#allocation5 + $0x18] sm:$0xff]  ;;  %vm179_vm1 = vcmask 261120   ;;  %s360_s15 = sshll.u32 %s621_s13, 7  ;;  %s173_s17 = scalar_lea.vmem [#allocation7], %s355_s26 }
  0x57   : > { %v383_v7 = vpack.c.bf16 %v178_v6, %v177_v4  ;;  %v174_v8 = vld [vmem:[%s149_s29] sm:$0xff]  ;;  %s268_s27 = sshll.u32 %s173_s17, 4  ;;  %s752_s28 = scalar_lea.hbm %s798_s2, %s360_s15  ;;  %s754_s27 = int_to_ptr.vmem [resolvable:$true] %s268_s27 }
  0x58   : > { %381 = vmatpush3.bf16.msra.mxu0 %v380_v5  ;;  %s255_s30 = scalar_lea.sflag [#allocation4], %s736_s20  ;;  %s505_s3 = scalar_lea.vmem %s754_s27, 128 }
  0x59   : > { %382 = vmatprep.subr.bf16.mxu0 %v581_v0  ;;  %p506_p4 = scmp.ne.s32.totalorder %s754_s27, %s505_s3  ;;  %s584_s13 = smov [#allocation7]  }
  0x5a   : > { %s509_s4 = sshll.u32 %s584_s13, 4  ;;  %s510_s4 = int_to_ptr.vmem [resolvable:$false] %s509_s4 }
  0x5b   : > { %p507_p6 = pnand %p506_p4, %p691_p12  ;;  %s511_s5 = scalar_lea.vmem %s510_s4, 256 }
  0x5c   : > { %384 = vmatpush3.bf16.msra.mxu0 %v383_v7  ;;  %p512_p10 = scmp.lt.s32.totalorder %s754_s27, %s510_s4  ;;  %p513_p13 = scmp.lt.s32.totalorder %s511_s5, %s505_s3 }
  0x5d   : > { %p508_p8 = pneg %p507_p6 }
  0x5e   : > { %p514_p3 = por %p513_p13, %p512_p10 }
  0x5f   : > { %377 = vmatmul.mubr.msk.f32.vlgmr.msra.gmra.mrb[0].mxu0 %vm179_vm1, %v174_v8 }
  0x60   : > { %p515_p7 = pnand %p514_p3, %p508_p8 }
 0x132   : > { %v249_v9 = vpop.f32.mrb[0].mxu0 }
 0x133   : > { %253 = vst.msk [vmem:[%s173_s17] sm:$0xff] %vm179_vm1, %v249_v9  ;;  %v378_v10 = vpop.f32.mrb[1].mxu0 }
 0x134   : > { %518 = shalt.err (!%p515_p7)
}
 0x135   : > { %s519_s6 = scalar_lea.hbm %s752_s28, 128  ;;  %s523_s24 = scalar_lea.hbm %s798_s2, 256 }
 0x136   : > { %p520_p9 = scmp.ne.s32.totalorder %s752_s28, %s519_s6  ;;  %p524_p0 = scmp.lt.u32.totalorder %s752_s28, %s798_s2 }
 0x137   : > { %p525_p1 = scmp.lt.u32.totalorder %s523_s24, %s519_s6  ;;  %p527_p4 = scmp.lt.u32.totalorder %s519_s6, %s752_s28 }
 0x138   : > { %p521_p2 = pnand %p520_p9, %p691_p12 }
 0x139   : > { %p526_p11 = por %p525_p1, %p524_p0 }
 0x13a   : > { %p522_p5 = pneg %p521_p2 }
 0x13b   : > { %p528_p6 = por %p527_p4, %p526_p11 }
 0x13d   : > { %p529_p8 = pnand %p528_p6, %p522_p5 }
 0x13f   : > { %532 = shalt.err (!%p529_p8)
}
 0x140   : > { %391 = dma.vmem_to_hbm [thread:$0]  (%p691_p12), %s754_s27, 128, %s752_s28, %s255_s30  }
 0x141 PF: > { %s280_s26 = sand.u32 1, %s563_s9   ;;  %p813_p10 = scmp.ne.s32.totalorder %s803_s16, 0 }
 0x142   : > { %p814_p13 = scmp.ge.s32.totalorder %s575_s12, 2  ;;  %s281_s19 = scalar_lea.sflag [#allocation4], %s280_s26 }
 0x144   : > { %p402_p3 = pnand %p814_p13, %p813_p10 }
 0x146   : > { %558 = dma.done.wait (!%p402_p3), %s281_s19, 128  }
 0x147   : > { %560 = vsyncadd (!%p402_p3), %s281_s19, 4294967168  ;;  %p16_p7 = scmp.ge.s32.totalorder %s656_s21, 4   ;;  %s815_s9 = smov %s567_s10 }
 0x148   : > { %s816_s10 = smov %s571_s11  ;;  %s817_s11 = smov %s687_s8 }
 0x149   : > { %s818_s12 = smov %s656_s21  ;;  %18 = sbr.rel (!%p16_p7) target bundleno = 6 (0x6), region = 77 }
 0x150   :  { %286 = vsyncpa [#allocation3], 1 }
 0x151   :  { %288 = vsyncpa [#allocation3 + $0x1], 1 }
 0x152   :  { %289 = vsyncpa [#allocation6], 1 }
 0x153   :  { %290 = vsyncpa [#allocation4], 1 }
 0x154   :  { %292 = vsyncpa [#allocation4 + $0x1], 1 }

// kernel: tpu_custom_call.1
= control target key start
LH: loop header
LB: loop body
LE: loop exit
PB: predicated region body
PF: predicated region fallthrough
CT: control target
= control target key end

     0   :  { %7 = vsyncpa [#allocation3], 0  ;;  %s796_s0 = inlined_call_operand.hbm [shape: f32[16,32], index: 0, kind: input, shape index: {}]   ;;  %s797_s1 = inlined_call_operand.hbm [shape: f32[32,32], index: 1, kind: input, shape index: {}]   ;;  %s798_s2 = inlined_call_operand.hbm [shape: f32[16,32], index: 2, kind: output, shape index: {}]  }
   0x1   :  { %9 = vsyncpa [#allocation3 + $0x1], 0 }
   0x2   :  { %10 = vsyncpa [#allocation6], 0 }
   0x3   :  { %11 = vsyncpa [#allocation4], 0 }
   0x4   :  { %13 = vsyncpa [#allocation4 + $0x1], 0  ;;  %s600_s9 = smov 0   ;;  %s602_s10 = smov 0  }
   0x5   :  { %s604_s11 = smov 0   ;;  %s606_s12 = smov 0  }
   0x6 LB: > { %s621_s13 = sadd.s32 4294967295, %s575_s12   ;;  %s348_s14 = sadd.s32 4294967294, %s575_s12   ;;  %s575_s12 = sphi %s606_s12, %s818_s12   ;;  %s571_s11 = sphi %s604_s11, %s817_s11   ;;  %s567_s10 = sphi %s602_s10, %s816_s10   ;;  %s563_s9 = sphi %s600_s9, %s815_s9  }
   0x7   : > { %p39_p0 = scmp.ne.s32.totalorder %s567_s10, %s563_s9  ;;  %p799_p1 = scmp.eq.s32.totalorder %s621_s13, 0 }
   0x8   : > { %p90_p3 = scmp.eq.s32.totalorder %s348_s14, 1  ;;  %p349_p5 = scmp.ge.s32.totalorder %s575_s12, 1 }
   0x9   : > { %p630_p4 = por %p799_p1, %p39_p0  ;;  %p97_p7 = scmp.lt.s32.totalorder %s575_s12, 3 }
   0xa   : > { %p635_p6 = por %p90_p3, %p39_p0  ;;  %s577_s18 = smov [#allocation5]  }
   0xb   : > { %s802_s15 = scalar_select %p630_p4, 1, 0 }
   0xc   : > { %s803_s16 = scalar_select %p635_p6, 1, 0 }
   0xd   : > { %p640_p8 = pnand %p349_p5, %p97_p7  ;;  %s109_s19 = sshll.u32 %s577_s18, 4  ;;  %s644_s19 = int_to_ptr.vmem [resolvable:$true] %s109_s19 }
   0xe   : > { %s656_s21 = sadd.s32 1, %s575_s12   ;;  %s26_s22 = sadd.s32 1, %s571_s11 }
   0xf   : > { %s804_s17 = scalar_select %p640_p8, 1, 0 }
  0x10   : > { %p393_p9 = pneg %p640_p8  ;;  %s23_s23 = ssub.s32 %s575_s12, %s656_s21 }
  0x11   : > { %s447_s26 = scalar_lea.hbm %s797_s1, 512 }
  0x12   : > { %p651_p11 = pnand %p393_p9, %p799_p1  ;;  %p448_p12 = scmp.ne.s32.totalorder %s797_s1, %s447_s26 }
  0x13   : > { %p454_p5 = scmp.lt.u32.totalorder %s447_s26, %s797_s1 }
  0x14   : > { %p449_p13 = pneg %p651_p11 }
  0x16   : > { %p450_p0 = pnand %p449_p13, %p448_p12 }
  0x18   : > { %p451_p3 = pneg %p450_p0 }
  0x1a   : > { %p456_p7 = pnand %p454_p5, %p451_p3 }
  0x1c   : > { %459 = shalt.err (!%p456_p7)
}
  0x1d   : > { %s460_s3 = scalar_lea.vmem %s644_s19, 512  ;;  %p468_p2 = scmp.lt.s32.totalorder %s644_s19, %s644_s19 }
  0x1e   : > { %p461_p9 = scmp.ne.s32.totalorder %s644_s19, %s460_s3  ;;  %p469_p6 = scmp.lt.s32.totalorder %s460_s3, %s460_s3 }
  0x20   : > { %p463_p10 = pnand %p461_p9, %p449_p13  ;;  %p470_p4 = por %p469_p6, %p468_p2 }
  0x22   : > { %p464_p1 = pneg %p463_p10 }
  0x24   : > { %p471_p8 = pnand %p470_p4, %p464_p1 }
  0x26   : > { %474 = shalt.err (!%p471_p8)
}
  0x27   : > { %s578_s4 = smov 128   ;;  %s579_s5 = smov 8  }
  0x28   : > { %396 = dma.hbm_to_vmem [thread:$0]  (!%p651_p11), %s797_s1, 512, %s644_s19, [#allocation6], %s578_s4, %s578_s4, %s579_s5  }
  0x29   : > { %p24_p2 = scmp.eq.s32.totalorder %s23_s23, 0  ;;  %p33_p1 = scmp.ne.s32.totalorder %s571_s11, %s567_s10 }
  0x2a   : > { %p34_p4 = scmp.eq.s32.totalorder %s575_s12, 0  ;;  %p406_p6 = scmp.lt.s32.totalorder %s575_s12, 2 }
  0x2b   : > { %s687_s8 = scalar_select %p24_p2, %s571_s11, %s26_s22  }
  0x2c   : > { %p35_p8 = por %p34_p4, %p33_p1  ;;  %p806_p10 = scmp.eq.s32.totalorder %s621_s13, 1 }
  0x2d   : > { %s123_s18 = sand.u32 1, %s571_s11   ;;  %s353_s24 = sshll.u32 %s575_s12, 7 }
  0x2e   : > { %p691_p12 = por %p806_p10, %p33_p1  ;;  %s352_s25 = sshll.u32 %s123_s18, 3 }
  0x2f   : > { %s700_s27 = scalar_lea.hbm %s796_s0, %s353_s24  ;;  %s127_s19 = scalar_lea.vmem [#allocation2], %s352_s25 }
  0x30   : > { %s134_s22 = sshll.u32 %s127_s19, 4  ;;  %p702_p11 = pnand %p406_p6, %p35_p8  ;;  %s706_s22 = int_to_ptr.vmem [resolvable:$true] %s134_s22 }
  0x31   : > { %s124_s28 = scalar_lea.sflag [#allocation3], %s123_s18  ;;  %s475_s29 = scalar_lea.hbm %s700_s27, 128 }
  0x32   : > { %p476_p13 = scmp.ne.s32.totalorder %s700_s27, %s475_s29  ;;  %p477_p0 = pneg %p702_p11 }
  0x33   : > { %s480_s4 = scalar_lea.hbm %s796_s0, 256  ;;  %p481_p7 = scmp.lt.u32.totalorder %s700_s27, %s796_s0 }
  0x34   : > { %p478_p3 = pnand %p477_p0, %p476_p13  ;;  %p482_p9 = scmp.lt.u32.totalorder %s480_s4, %s475_s29 }
  0x35   : > { %p484_p1 = scmp.lt.u32.totalorder %s475_s29, %s700_s27 }
  0x36   : > { %p479_p5 = pneg %p478_p3  ;;  %p483_p2 = por %p482_p9, %p481_p7 }
  0x38   : > { %p485_p4 = por %p484_p1, %p483_p2 }
  0x3a   : > { %p486_p6 = pnand %p485_p4, %p479_p5 }
  0x3c   : > { %489 = shalt.err (!%p486_p6)
}
  0x3d   : > { %s490_s7 = scalar_lea.vmem %s706_s22, 128  ;;  %s580_s18 = smov [#allocation2]  }
  0x3e   : > { %p491_p8 = scmp.ne.s32.totalorder %s706_s22, %s490_s7  ;;  %s495_s24 = sshll.u32 %s580_s18, 4  ;;  %s496_s24 = int_to_ptr.vmem [resolvable:$false] %s495_s24 }
  0x3f   : > { %s497_s25 = scalar_lea.vmem %s496_s24, 256  ;;  %p498_p3 = scmp.lt.s32.totalorder %s706_s22, %s496_s24 }
  0x40   : > { %p493_p10 = pnand %p491_p8, %p477_p0  ;;  %p499_p7 = scmp.lt.s32.totalorder %s497_s25, %s490_s7 }
  0x42   : > { %p494_p13 = pneg %p493_p10  ;;  %p500_p9 = por %p499_p7, %p498_p3 }
  0x44   : > { %p501_p2 = pnand %p500_p9, %p494_p13 }
  0x46   : > { %504 = shalt.err (!%p501_p2)
}
  0x47   : > { %400 = dma.hbm_to_vmem [thread:$0]  (!%p702_p11), %s700_s27, 128, %s706_s22, %s124_s28  }
  0x48   : > { %p809_p5 = scmp.ne.s32.totalorder %s804_s17, 0 }
  0x49   : > { %s736_s20 = sand.u32 (!%p809_p5), 1, %s567_s10   ;;  %p810_p0 = scmp.ne.s32.totalorder (!%p809_p5), %s802_s15, 0 }
  0x4a   : > { %143 = sbr.rel (%p809_p5) target bundleno = 321 (0x141), region = 28  ;;  %s355_s26 = sshll.u32 (!%p809_p5), %s736_s20, 3 }
  0x4b   : > { %s146_s19 = scalar_lea.sflag (!%p809_p5), [#allocation3], %s736_s20  ;;  %s149_s29 = scalar_lea.vmem (!%p809_p5), [#allocation2], %s355_s26 }
  0x51   : > { %550 = dma.done.wait (%p810_p0), %s146_s19, 128  }
  0x52   : > { %552 = vsyncadd (%p810_p0), %s146_s19, 4294967168  ;;  %p811_p1 = scmp.eq.s32.totalorder %s621_s13, 0 }
  0x54   : > { %554 = dma.done.wait (%p811_p1), [#allocation6], 512   ;;  %p812_p11 = pmov %p811_p1 }
  0x55   : > { %v581_v0 = vmov 0.0|0.0   ;;  %vm582_vm0 = vmmov 0   ;;  %v583_v1 = vmov 0.0   ;;  %v175_v2 = vld [vmem:[#allocation5] sm:$0xff]  ;;  %v176_v3 = vld [vmem:[#allocation5 + $0x8] sm:$0xff]  ;;  %v177_v4 = vld [vmem:[#allocation5 + $0x10] sm:$0xff] }
  0x56   : > { %556 = vsyncadd (%p812_p11), [#allocation6], 4294966784  ;;  %379 = vmatprep.subr.bf16.mxu0 %v581_v0  ;;  %376 = vmatprep.mubr.msk.f32.mxu0 %vm582_vm0, %v583_v1  ;;  %v380_v5 = vpack.c.bf16 %v176_v3, %v175_v2  ;;  %v178_v6 = vld [vmem:[#allocation5 + $0x18] sm:$0xff]  ;;  %vm179_vm1 = vcmask 261120   ;;  %s360_s15 = sshll.u32 %s621_s13, 7  ;;  %s173_s17 = scalar_lea.vmem [#allocation7], %s355_s26 }
  0x57   : > { %v383_v7 = vpack.c.bf16 %v178_v6, %v177_v4  ;;  %v174_v8 = vld [vmem:[%s149_s29] sm:$0xff]  ;;  %s268_s27 = sshll.u32 %s173_s17, 4  ;;  %s752_s28 = scalar_lea.hbm %s798_s2, %s360_s15  ;;  %s754_s27 = int_to_ptr.vmem [resolvable:$true] %s268_s27 }
  0x58   : > { %381 = vmatpush3.bf16.msra.mxu0 %v380_v5  ;;  %s255_s30 = scalar_lea.sflag [#allocation4], %s736_s20  ;;  %s505_s3 = scalar_lea.vmem %s754_s27, 128 }
  0x59   : > { %382 = vmatprep.subr.bf16.mxu0 %v581_v0  ;;  %p506_p4 = scmp.ne.s32.totalorder %s754_s27, %s505_s3  ;;  %s584_s13 = smov [#allocation7]  }
  0x5a   : > { %s509_s4 = sshll.u32 %s584_s13, 4  ;;  %s510_s4 = int_to_ptr.vmem [resolvable:$false] %s509_s4 }
  0x5b   : > { %p507_p6 = pnand %p506_p4, %p691_p12  ;;  %s511_s5 = scalar_lea.vmem %s510_s4, 256 }
  0x5c   : > { %384 = vmatpush3.bf16.msra.mxu0 %v383_v7  ;;  %p512_p10 = scmp.lt.s32.totalorder %s754_s27, %s510_s4  ;;  %p513_p13 = scmp.lt.s32.totalorder %s511_s5, %s505_s3 }
  0x5d   : > { %p508_p8 = pneg %p507_p6 }
  0x5e   : > { %p514_p3 = por %p513_p13, %p512_p10 }
  0x5f   : > { %377 = vmatmul.mubr.msk.f32.vlgmr.msra.gmra.mrb[0].mxu0 %vm179_vm1, %v174_v8 }
  0x60   : > { %p515_p7 = pnand %p514_p3, %p508_p8 }
 0x132   : > { %v249_v9 = vpop.f32.mrb[0].mxu0 }
 0x133   : > { %253 = vst.msk [vmem:[%s173_s17] sm:$0xff] %vm179_vm1, %v249_v9  ;;  %v378_v10 = vpop.f32.mrb[1].mxu0 }
 0x134   : > { %518 = shalt.err (!%p515_p7)
}
 0x135   : > { %s519_s6 = scalar_lea.hbm %s752_s28, 128  ;;  %s523_s24 = scalar_lea.hbm %s798_s2, 256 }
 0x136   : > { %p520_p9 = scmp.ne.s32.totalorder %s752_s28, %s519_s6  ;;  %p524_p0 = scmp.lt.u32.totalorder %s752_s28, %s798_s2 }
 0x137   : > { %p525_p1 = scmp.lt.u32.totalorder %s523_s24, %s519_s6  ;;  %p527_p4 = scmp.lt.u32.totalorder %s519_s6, %s752_s28 }
 0x138   : > { %p521_p2 = pnand %p520_p9, %p691_p12 }
 0x139   : > { %p526_p11 = por %p525_p1, %p524_p0 }
 0x13a   : > { %p522_p5 = pneg %p521_p2 }
 0x13b   : > { %p528_p6 = por %p527_p4, %p526_p11 }
 0x13d   : > { %p529_p8 = pnand %p528_p6, %p522_p5 }
 0x13f   : > { %532 = shalt.err (!%p529_p8)
}
 0x140   : > { %391 = dma.vmem_to_hbm [thread:$0]  (%p691_p12), %s754_s27, 128, %s752_s28, %s255_s30  }
 0x141 PF: > { %s280_s26 = sand.u32 1, %s563_s9   ;;  %p813_p10 = scmp.ne.s32.totalorder %s803_s16, 0 }
 0x142   : > { %p814_p13 = scmp.ge.s32.totalorder %s575_s12, 2  ;;  %s281_s19 = scalar_lea.sflag [#allocation4], %s280_s26 }
 0x144   : > { %p402_p3 = pnand %p814_p13, %p813_p10 }
 0x146   : > { %558 = dma.done.wait (!%p402_p3), %s281_s19, 128  }
 0x147   : > { %560 = vsyncadd (!%p402_p3), %s281_s19, 4294967168  ;;  %p16_p7 = scmp.ge.s32.totalorder %s656_s21, 4   ;;  %s815_s9 = smov %s567_s10 }
 0x148   : > { %s816_s10 = smov %s571_s11  ;;  %s817_s11 = smov %s687_s8 }
 0x149   : > { %s818_s12 = smov %s656_s21  ;;  %18 = sbr.rel (!%p16_p7) target bundleno = 6 (0x6), region = 77 }
 0x150   :  { %286 = vsyncpa [#allocation3], 1 }
 0x151   :  { %288 = vsyncpa [#allocation3 + $0x1], 1 }
 0x152   :  { %289 = vsyncpa [#allocation6], 1 }
 0x153   :  { %290 = vsyncpa [#allocation4], 1 }
 0x154   :  { %292 = vsyncpa [#allocation4 + $0x1], 1 }

</bundles_post_ra>
